<compile_context>
chip_gen: v7x
topology: tpu7x:2x2x1
jax: 0.10.0
libtpu: 0.0.40
codegen_flags: <defaults>
</compile_context>

<pallas_src>
import functools
import math

import jax
import jax.numpy as jnp
from jax import lax
from jax.experimental import pallas as pl
from jax.experimental.pallas import tpu as pltpu

_LOG_2PI = math.log(2.0 * math.pi)


def _round_up(x: int, m: int) -> int:
    return ((x + m - 1) // m) * m


@functools.lru_cache(maxsize=None)
def _roll_matches_jnp() -> bool:
    """True iff pltpu.roll(x, s, a) == jnp.roll(x, s, a) on this backend.

    The wrap-column neighbour construction is direction-sensitive, so the
    rotation convention is probed once on hardware instead of hard-coded.
    """
    def probe(x_ref, o_ref):
        o_ref[...] = pltpu.roll(x_ref[...], 1, 1)

    x = lax.broadcasted_iota(jnp.float32, (8, 128), 1)
    out = jax.jit(pl.pallas_call(
        probe, out_shape=jax.ShapeDtypeStruct((8, 128), jnp.float32)))(x)
    return float(out[0, 0]) == 127.0        # jnp convention: out[0] = x[-1]


def _loss_kernel(x_ref, loc_ref, inv_scale_ref, act_ref, zz_ref,
                 *, m2, lam, l2, shift_int, shift_wrap):
    """One (tb, N) batch tile, lattice flattened row-major onto the lane axis.

    Emits per-sample phi^4 actions and per-sample sum(z^2) as lane-dense
    (1, tb) rows; no cross-step state, so the batch grid axis is parallel.
    """
    x = x_ref[...]                                      # (tb, N) f32
    n = x.shape[-1]

    # Gaussian standardized residual; exp(-log_scale) precomputed in wrapper.
    z = (x - loc_ref[...]) * inv_scale_ref[...]
    zz = z * z

    # phi^4 potential density: 0.5*m2*phi^2 + lam*phi^4.
    phi2 = x * x
    dens = phi2 * (0.5 * m2 + lam * phi2)

    # Kinetic mu=0 (L1 direction): the periodic neighbour of the row-major
    # flat view is a single full-lattice rotation by L2 sites (the summed
    # squared difference is invariant to the rotation direction).
    d1 = pltpu.roll(x, l2, 1) - x

    # Kinetic mu=1 (L2 direction): interior neighbour is a 1-site rotation;
    # the per-row periodic wrap (column j == L2-1) is patched with a second
    # rotation + lane mask.  Replaces the former column-major duplicate input
    # (halves HBM reads, removes the XLA transpose pass).
    lane = lax.broadcasted_iota(jnp.int32, x.shape, 1)
    if (l2 & (l2 - 1)) == 0:
        col = lane & (l2 - 1)
    else:
        col = lane % l2  # TODO(synk): verify vector irem lowering for non-pow2 L2.
    nbr = jnp.where(col == (l2 - 1),
                    pltpu.roll(x, shift_wrap, 1),
                    pltpu.roll(x, shift_int, 1))
    d2 = nbr - x

    dens = dens + 0.5 * (d1 * d1 + d2 * d2)

    # Per-sample reductions on the otherwise-idle MXU, produced directly in
    # lane orientation -> unmasked lane-dense (1, tb) stores.
    ones_row = jnp.ones((1, n), jnp.float32)
    dims = (((1,), (1,)), ((), ()))
    act_ref[...] = lax.dot_general(ones_row, dens, dims,
                                   precision=lax.Precision.HIGHEST,
                                   preferred_element_type=jnp.float32)
    zz_ref[...] = lax.dot_general(ones_row, zz, dims,
                                  precision=lax.Precision.HIGHEST,
                                  preferred_element_type=jnp.float32)


@functools.partial(
    jax.jit,
    static_argnames=("m2", "lam", "l2", "tb", "shift_int", "shift_wrap"))
def _run_tiles(x_flat, loc_flat, inv_scale_flat, *, m2, lam, l2, tb,
               shift_int, shift_wrap):
    b_pad, n = x_flat.shape
    num_blocks = b_pad // tb
    tile_bytes = tb * n * 4

    kernel = functools.partial(_loss_kernel, m2=m2, lam=lam, l2=l2,
                               shift_int=shift_int, shift_wrap=shift_wrap)

    return pl.pallas_call(
        kernel,
        grid=(num_blocks,),
        in_specs=[
            pl.BlockSpec((tb, n), lambda b: (b, 0)),     # samples (row-major flat)
            pl.BlockSpec((1, n), lambda b: (0, 0)),      # loc (resident, DMA'd once)
            pl.BlockSpec((1, n), lambda b: (0, 0)),      # exp(-log_scale) (resident)
        ],
        out_specs=(
            pl.BlockSpec((1, tb), lambda b: (0, b)),     # per-sample actions
            pl.BlockSpec((1, tb), lambda b: (0, b)),     # per-sample sum(z^2)
        ),
        out_shape=(
            jax.ShapeDtypeStruct((1, b_pad), jnp.float32),
            jax.ShapeDtypeStruct((1, b_pad), jnp.float32),
        ),
        compiler_params=pltpu.CompilerParams(
            # No carried state between grid steps -> batch axis is parallel
            # (v7x 2-TC split); harmless on 1-TC v5e/v6e.
            dimension_semantics=("parallel",),
            vmem_limit_bytes=int(min(48 << 20, max(16 << 20, 10 * tile_bytes))),
        ),
        cost_estimate=pl.CostEstimate(
            flops=20 * b_pad * n,
            transcendentals=0,
            bytes_accessed=4 * (b_pad * n + 2 * n + 2 * b_pad),
        ),
    )(x_flat, loc_flat, inv_scale_flat)


def _choose_batch_tile(batch: int, n_sites: int, itemsize: int = 4,
                       target_bytes: int = 4 << 20) -> int:
    """Rows per batch tile: ~target_bytes per (tb, N) input tile (amortises the
    per-grid-step overhead), a multiple of 128 whenever the batch is split (so
    the lane-dense (1, tb) output blocks stay aligned), and never the whole
    batch unless it already fits one tile (oversized batches are padded and
    streamed, not made VMEM-resident)."""
    rows = max(8, target_bytes // max(1, n_sites * itemsize))
    if batch <= rows:
        return _round_up(batch, 8)
    return max(128, (rows // 128) * 128)


def maximum_likelihood_loss(samples, loc, log_scale, *, m2=1.0, lam=0.5,
                            batch_tile=None):
    """Forward pass of the Loss module.

    Returns ((loss - actions).mean(), loss.mean(0), actions) with
    loss = -log_prob(samples) under the diagonal-Gaussian model and
    actions = phi^4 lattice action of each configuration.
    """
    B, L1, L2 = samples.shape
    N = L1 * L2

    x_flat = samples.astype(jnp.float32).reshape(B, N)      # free row-major reshape
    loc_flat = loc.astype(jnp.float32).reshape(1, N)
    log_scale = log_scale.astype(jnp.float32)
    inv_scale_flat = jnp.exp(-log_scale).reshape(1, N)

    tb = int(batch_tile) if batch_tile is not None else _choose_batch_tile(B, N)
    b_pad = _round_up(B, tb)
    if b_pad > tb and tb % 128 != 0:
        raise ValueError(f"batch_tile={tb} must be a multiple of 128 when the "
                         f"batch ({B}) is split across grid steps")
    if b_pad != B:                     # pad instead of making the batch resident
        x_flat = jnp.pad(x_flat, ((0, b_pad - B), (0, 0)))

    if _roll_matches_jnp():            # out[p] = x[(p - shift) % N]
        shift_int, shift_wrap = N - 1, L2 - 1
    else:                              # out[p] = x[(p + shift) % N]
        shift_int, shift_wrap = 1, (N - L2 + 1) % N

    actions_row, zz_row = _run_tiles(
        x_flat, loc_flat, inv_scale_flat,
        m2=float(m2), lam=float(lam), l2=L2, tb=tb,
        shift_int=shift_int, shift_wrap=shift_wrap)

    actions = actions_row[0, :B]
    # per-sample Gaussian NLL: 0.5*sum z^2 + sum(log_scale) + 0.5*N*log(2*pi)
    nll_const = jnp.sum(log_scale) + 0.5 * N * _LOG_2PI
    loss = 0.5 * zz_row[0, :B] + nll_const
    loss_mean = jnp.mean(loss)
    kl = loss_mean - jnp.mean(actions)             # == mean(loss - actions)
    return kl, loss_mean, actions


def _reference(samples, loc, log_scale, *, m2=1.0, lam=0.5):
    """Pure-JAX reference of the same forward pass."""
    z = (samples - loc[None]) * jnp.exp(-log_scale)[None]
    logp = -0.5 * z * z - log_scale[None] - 0.5 * jnp.log(2.0 * jnp.pi)
    loss = -jnp.sum(logp, axis=(1, 2))
    kin = sum(0.5 * (jnp.roll(samples, -1, axis=a) - samples) ** 2 for a in (1, 2))
    dens = kin + 0.5 * m2 * samples ** 2 + lam * samples ** 4
    actions = jnp.sum(dens, axis=(1, 2))
    return jnp.mean(loss - actions), jnp.mean(loss), actions


if __name__ == "__main__":
    key = jax.random.PRNGKey(0)
    k1, k2, k3, k4 = jax.random.split(key, 4)

    # Small demo consistent with the module: lat_shape=[16, 16], batch_size=8.
    B, L1, L2 = 8, 16, 16
    samples = jax.random.normal(k1, (B, L1, L2), dtype=jnp.float32)
    loc = 0.1 * jax.random.normal(k2, (L1, L2), dtype=jnp.float32)
    log_scale = 0.05 * jax.random.normal(k3, (L1, L2), dtype=jnp.float32)

    kl, loss_mean, actions = maximum_likelihood_loss(samples, loc, log_scale)
    jax.block_until_ready((kl, loss_mean, actions))

    kl_r, lm_r, act_r = _reference(samples, loc, log_scale)
    assert actions.shape == (B,)
    assert jnp.allclose(kl, kl_r, rtol=1e-4, atol=1e-3), (kl, kl_r)
    assert jnp.allclose(loss_mean, lm_r, rtol=1e-4, atol=1e-3), (loss_mean, lm_r)
    assert jnp.allclose(actions, act_r, rtol=1e-4, atol=1e-3)

    # Larger batch: exercises the multi-block parallel grid path.
    B2 = 512
    samples2 = jax.random.normal(k4, (B2, L1, L2), dtype=jnp.float32)
    kl2, lm2, act2 = maximum_likelihood_loss(samples2, loc, log_scale,
                                             batch_tile=128)
    jax.block_until_ready((kl2, lm2, act2))

    kl2_r, lm2_r, act2_r = _reference(samples2, loc, log_scale)
    assert act2.shape == (B2,)
    assert jnp.allclose(kl2, kl2_r, rtol=1e-3, atol=1e-2), (kl2, kl2_r)
    assert jnp.allclose(lm2, lm2_r, rtol=1e-3, atol=1e-2), (lm2, lm2_r)
    assert jnp.allclose(act2, act2_r, rtol=1e-4, atol=1e-3)

    print("KERNEL_OK")
</pallas_src>

<mosaic_0001>
module attributes {stable_mosaic.version = 11 : i64} {
  func.func @probe(%arg0: memref<8x128xf32, #tpu.memory_space<vmem>>, %arg1: memref<8x128xf32, #tpu.memory_space<vmem>>) attributes {dimension_semantics = [], scalar_prefetch = 0 : i64, scratch_operands = 0 : i64, tpu.core_type = #tpu.core_type<tc>} {
    %c0 = arith.constant 0 : index
    %c0_0 = arith.constant 0 : index
    %0 = vector.load %arg0[%c0, %c0_0] : memref<8x128xf32, #tpu.memory_space<vmem>>, vector<8x128xf32>
    %c1_i32 = arith.constant 1 : i32
    %1 = tpu.dynamic_rotate %0 by %c1_i32 dim 1 : vector<8x128xf32>, i32 -> vector<8x128xf32>
    %c0_1 = arith.constant 0 : index
    %c0_2 = arith.constant 0 : index
    %2 = vector.load %arg1[%c0_1, %c0_2] : memref<8x128xf32, #tpu.memory_space<vmem>>, vector<8x128xf32>
    tpu.vector_store %arg1[%c0_1, %c0_2], %1 {strides = array<i32>} : memref<8x128xf32, #tpu.memory_space<vmem>>, vector<8x128xf32>,
    return
  }
}

</mosaic_0001>

<bundles_post_ra>
// kernel: tpu_custom_call.1
= control target key start
LH: loop header
LB: loop body
LE: loop exit
PB: predicated region body
PF: predicated region fallthrough
CT: control target
= control target key end

     0   :  { %6 = vsyncpa [#allocation3], 0  ;;  %s128_s0 = inlined_call_operand.hbm [shape: f32[8,128], index: 0, kind: input, shape index: {}]   ;;  %s129_s1 = inlined_call_operand.hbm [shape: f32[8,128], index: 1, kind: output, shape index: {}]  }
   0x1   :  { %7 = vsyncpa [#allocation4], 0  ;;  %s91_s6 = smov [#allocation2]   ;;  %s43_s10 = scalar_lea.hbm %s128_s0, 128 }
   0x2   :  { %s14_s7 = sshll.u32 %s91_s6, 4  ;;  %p44_p0 = scmp.ne.s32.totalorder %s128_s0, %s43_s10  ;;  %s15_s7 = int_to_ptr.vmem [resolvable:$true] %s14_s7 }
   0x3   :  { %p47_p1 = scmp.lt.u32.totalorder %s43_s10, %s128_s0 }
   0x5   :  { %p49_p2 = pnand %p47_p1, %p44_p0 }
   0x7   :  { %52 = shalt.err (!%p49_p2)
}
   0x8   :  { %s53_s15 = scalar_lea.vmem %s15_s7, 128  ;;  %p58_p4 = scmp.lt.s32.totalorder %s15_s7, %s15_s7 }
   0x9   :  { %p54_p3 = scmp.ne.s32.totalorder %s15_s7, %s53_s15  ;;  %p59_p5 = scmp.lt.s32.totalorder %s53_s15, %s53_s15 }
   0xb   :  { %p60_p6 = por %p59_p5, %p58_p4 }
   0xd   :  { %p61_p7 = pnand %p60_p6, %p54_p3 }
   0xf   :  { %64 = shalt.err (!%p61_p7)
}
  0x10   :  { %17 = dma.hbm_to_vmem [thread:$0]  %s128_s0, 128, %s15_s7, [#allocation3]  }
  0x11   :  { %87 = dma.done.wait [#allocation3], 128  }
  0x12   :  { %88 = vsyncadd [#allocation3], 4294967168  ;;  %v21_v0 = vld [vmem:[#allocation2] sm:$0xff]  ;;  %s92_s18 = smov 1   ;;  %s93_s19 = smov [#allocation5]  }
  0x13   :  { %22 = vrot.lane.b32.xlu0 %v21_v0, %s92_s18  ;;  %s31_s20 = sshll.u32 %s93_s19, 4  ;;  %s32_s20 = int_to_ptr.vmem [resolvable:$true] %s31_s20 }
  0x14   :  { %s65_s21 = scalar_lea.vmem %s32_s20, 128  ;;  %p70_p9 = scmp.lt.s32.totalorder %s32_s20, %s32_s20 }
  0x15   :  { %p66_p8 = scmp.ne.s32.totalorder %s32_s20, %s65_s21  ;;  %p71_p10 = scmp.lt.s32.totalorder %s65_s21, %s65_s21 }
  0x17   :  { %p72_p11 = por %p71_p10, %p70_p9 }
  0x19   :  { %p73_p12 = pnand %p72_p11, %p66_p8 }
  0x85   :  { %v23_v1 = vpop.permute.xlu0 %22 }
  0x86   :  { %24 = vst [vmem:[#allocation5] sm:$0xff] %v23_v1 }
  0x87   :  { %76 = shalt.err (!%p73_p12)
}
  0x88   :  { %s77_s0 = scalar_lea.hbm %s129_s1, 128 }
  0x89   :  { %p78_p13 = scmp.ne.s32.totalorder %s129_s1, %s77_s0  ;;  %p81_p0 = scmp.lt.u32.totalorder %s77_s0, %s129_s1 }
  0x8b   :  { %p83_p1 = pnand %p81_p0, %p78_p13 }
  0x8d   :  { %86 = shalt.err (!%p83_p1)
}
  0x8e   :  { %34 = dma.vmem_to_hbm [thread:$0]  %s32_s20, 128, %s129_s1, [#allocation4]  }
  0x8f   :  { %89 = dma.done.wait [#allocation4], 128  }
  0x90   :  { %90 = vsyncadd [#allocation4], 4294967168 }
  0x91   :  { %38 = vsyncpa [#allocation3], 1 }
  0x92   :  { %39 = vsyncpa [#allocation4], 1 }

</bundles_post_ra>
